<compile_context>
chip_gen: v6e
topology: v6e:2x2x1
jax: 0.10.0
libtpu: 0.0.40
codegen_flags: <defaults>
</compile_context>

<pallas_src>
import jax
import jax.numpy as jnp
from jax.experimental import pallas as pl
from jax.experimental.pallas import tpu as pltpu

_MIB = 1024 * 1024


def _round_up(v, m):
    return ((v + m - 1) // m) * m


def _cdiv(a, b):
    return -(-a // b)


def _vmem_capacity_bytes():
    """Physical VMEM per TensorCore: 128 MiB (v4/v5e/v6e), 64 MiB (v7x)."""
    try:
        info = pltpu.get_tpu_info()
        cap = int(getattr(info, "vmem_capacity_bytes", 0) or 0)
        if cap > 0:
            return cap
    except Exception:
        pass
    try:
        kind = jax.devices()[0].device_kind.lower()
    except Exception:
        kind = ""
    if "v7" in kind:
        return 64 * _MIB
    if any(t in kind for t in ("v4", "v5", "v6", "trillium", "lite")):
        return 128 * _MIB
    return 64 * _MIB  # unknown part: be conservative


def _h_chunk_candidates(h_padded):
    """Divisors of the padded hidden dim that are multiples of 128, descending."""
    m = h_padded // 128
    return [d * 128 for d in range(m, 0, -1) if m % d == 0]


# ---------------------------------------------------------------------------
# Kernels
# ---------------------------------------------------------------------------
def _ffn_resident_kernel(x_ref, w1_ref, b1_ref, w2_ref, b2_ref, o_ref):
    # In-kernel cast of the activation block to the MXU dtype (no HBM pre-pass).
    x = x_ref[...].astype(w1_ref.dtype)
    h = jnp.dot(x, w1_ref[...], preferred_element_type=jnp.float32)
    # Bias-add + ReLU in f32 on the VPU (v5e has no bf16 VPU path).
    h = jnp.maximum(h + b1_ref[...], 0.0).astype(w2_ref.dtype)
    out = jnp.dot(h, w2_ref[...], preferred_element_type=jnp.float32)
    o_ref[...] = (out + b2_ref[...]).astype(o_ref.dtype)


def _ffn_htiled_kernel(x_ref, w1_ref, b1_ref, w2_ref, b2_ref, o_ref, acc_ref):
    # Hidden dim is tiled; ReLU is elementwise in H so per-chunk ReLU is exact.
    h_idx = pl.program_id(1)

    @pl.when(h_idx == 0)
    def _():
        acc_ref[...] = jnp.zeros_like(acc_ref)

    x = x_ref[...].astype(w1_ref.dtype)
    h = jnp.dot(x, w1_ref[...], preferred_element_type=jnp.float32)
    h = jnp.maximum(h + b1_ref[...], 0.0).astype(w2_ref.dtype)
    acc_ref[...] += jnp.dot(h, w2_ref[...], preferred_element_type=jnp.float32)

    @pl.when(h_idx == pl.num_programs(1) - 1)
    def _():
        o_ref[...] = (acc_ref[...] + b2_ref[...]).astype(o_ref.dtype)


# ---------------------------------------------------------------------------
# Parameter preparation (once, outside the per-forward path)
# ---------------------------------------------------------------------------
def prepare_params(w1, b1, w2, b2, *, mxu_dtype=jnp.bfloat16):
    """Pad feature dims to multiples of 128 and cast weights to the MXU dtype.

    w1: [D_in, H], b1: [H], w2: [H, D_out], b2: [D_out]
    (weights stored transposed vs. nn.Linear's [out, in] layout)
    """
    D_in, H = w1.shape
    D_out = w2.shape[1]
    D_in_p, H_p, D_out_p = (_round_up(d, 128) for d in (D_in, H, D_out))
    w1p = jnp.zeros((D_in_p, H_p), mxu_dtype).at[:D_in, :H].set(w1.astype(mxu_dtype))
    w2p = jnp.zeros((H_p, D_out_p), mxu_dtype).at[:H, :D_out].set(w2.astype(mxu_dtype))
    b1p = jnp.zeros((1, H_p), jnp.float32).at[0, :H].set(
        b1.reshape(-1).astype(jnp.float32))
    b2p = jnp.zeros((1, D_out_p), jnp.float32).at[0, :D_out].set(
        b2.reshape(-1).astype(jnp.float32))
    return dict(w1=w1p, b1=b1p, w2=w2p, b2=b2p, dims=(D_in, H, D_out))


# ---------------------------------------------------------------------------
# Forward wrapper
# ---------------------------------------------------------------------------
def encoder_layer(x, params, *, block_b=512, out_dtype=None,
                  force_h_tiling=False, max_hidden_chunk=None):
    """y = relu(x @ w1 + b1) @ w2 + b2   (EncoderLayer.forward).

    x: [B, D_in]; params: output of prepare_params(). Returns [B, D_out].
    """
    D_in, H, D_out = params["dims"]
    w1p, b1p, w2p, b2p = params["w1"], params["b1"], params["w2"], params["b2"]
    D_in_p, H_p = w1p.shape
    D_out_p = w2p.shape[1]

    B = x.shape[0]
    assert x.shape[1] == D_in, "feature dim mismatch"
    out_dtype = x.dtype if out_dtype is None else out_dtype

    x_item = jnp.dtype(x.dtype).itemsize
    w_item = jnp.dtype(w1p.dtype).itemsize
    o_item = jnp.dtype(out_dtype).itemsize

    # ---- Generation-aware VMEM budget. ----
    cap = _vmem_capacity_bytes()
    headroom = 8 * _MIB if cap <= 64 * _MIB else 16 * _MIB
    limit_cap = cap - headroom          # max vmem_limit_bytes (~56 MiB v7x / ~112 MiB v5e,v6e)
    budget = limit_cap - 4 * _MIB       # working budget used for sizing

    # Resident-weight footprint (single-buffered: constant index map, never re-fetched).
    resident_w = (D_in_p * H_p + H_p * D_out_p) * w_item + (H_p + D_out_p) * 4

    def vmem_resident(t, wbuf=1):
        return (wbuf * resident_w
                + 2 * t * D_in_p * x_item      # x block, double-buffered
                + 2 * t * D_out_p * o_item     # out block, double-buffered
                + t * D_in_p * w_item          # in-kernel MXU-dtype copy of x
                + t * H_p * 4                  # f32 intermediate h
                + t * H_p * w_item)            # downcast of h feeding matmul 2

    def vmem_htiled(t, th, wbuf=2):
        w_tile = (D_in_p * th + th * D_out_p) * w_item + th * 4
        return (wbuf * w_tile + D_out_p * 4    # per-step weight chunks + resident b2
                + 2 * t * D_in_p * x_item
                + 2 * t * D_out_p * o_item
                + t * D_out_p * 4              # f32 accumulator scratch
                + t * D_in_p * w_item
                + t * th * 4 + t * th * w_item)

    # ---- Batch tile selection (balanced, megacore-friendly). ----
    B_r8 = _round_up(B, 8)

    def balanced_tb():
        t = min(_round_up(block_b, 8), B_r8)
        t = _round_up(_cdiv(B_r8, _cdiv(B_r8, t)), 8)      # no mostly-padding last tile
        if _cdiv(B_r8, t) < 2 and B_r8 >= 16:               # keep both TCs busy on v7x
            t = _round_up(_cdiv(B_r8, 2), 8)
        return t

    tb = balanced_tb()
    tb_floor = max(8, min(128, B_r8))   # never starve the MXU M dim below ~128 rows
    while tb > tb_floor and vmem_resident(tb) > budget:
        tb = max(tb_floor, _round_up(tb // 2, 8))

    use_h_tiling = force_h_tiling or vmem_resident(tb) > budget
    th = H_p
    if use_h_tiling:
        tb = balanced_tb()              # keep M large; shrink the hidden dim instead
        cands = _h_chunk_candidates(H_p)
        if max_hidden_chunk is not None:
            cands = [c for c in cands if c <= max_hidden_chunk] or [128]
        th = cands[-1]
        for cand in cands:
            if vmem_htiled(tb, cand) <= budget:
                th = cand
                break
        while tb > tb_floor and vmem_htiled(tb, th) > budget:
            tb = max(tb_floor, _round_up(tb // 2, 8))

    B_p = _round_up(B_r8, tb)

    # ---- Pad the activation only if needed (no dtype cast in HBM). ----
    if (B_p, D_in_p) == tuple(x.shape):
        xp = x
    else:
        xp = jnp.zeros((B_p, D_in_p), x.dtype).at[:B, :D_in].set(x)

    est = vmem_htiled(tb, th) if use_h_tiling else vmem_resident(tb, wbuf=2)
    vmem_limit = int(min(limit_cap, max(est + 4 * _MIB, 32 * _MIB)))

    def run(single_buffer_weights):
        wkw = dict(pipeline_mode=pl.Buffered(1)) if single_buffer_weights else {}
        if not use_h_tiling:
            grid = (B_p // tb,)
            in_specs = [
                pl.BlockSpec((tb, D_in_p), lambda i: (i, 0)),              # x: batch-tiled
                pl.BlockSpec((D_in_p, H_p), lambda i: (0, 0), **wkw),      # w1: resident
                pl.BlockSpec((1, H_p), lambda i: (0, 0), **wkw),           # b1
                pl.BlockSpec((H_p, D_out_p), lambda i: (0, 0), **wkw),     # w2: resident
                pl.BlockSpec((1, D_out_p), lambda i: (0, 0), **wkw),       # b2
            ]
            out_specs = pl.BlockSpec((tb, D_out_p), lambda i: (i, 0))
            kernel = _ffn_resident_kernel
            scratch = []
            dims_sem = ("parallel",)
        else:
            grid = (B_p // tb, H_p // th)
            in_specs = [
                pl.BlockSpec((tb, D_in_p), lambda i, h: (i, 0)),
                pl.BlockSpec((D_in_p, th), lambda i, h: (0, h)),           # w1 column chunk
                pl.BlockSpec((1, th), lambda i, h: (0, h)),                # b1 chunk
                pl.BlockSpec((th, D_out_p), lambda i, h: (h, 0)),          # w2 row chunk
                pl.BlockSpec((1, D_out_p), lambda i, h: (0, 0), **wkw),    # b2: resident
            ]
            out_specs = pl.BlockSpec((tb, D_out_p), lambda i, h: (i, 0))
            kernel = _ffn_htiled_kernel
            scratch = [pltpu.VMEM((tb, D_out_p), jnp.float32)]
            dims_sem = ("parallel", "arbitrary")

        return pl.pallas_call(
            kernel,
            out_shape=jax.ShapeDtypeStruct((B_p, D_out_p), out_dtype),
            grid_spec=pltpu.PrefetchScalarGridSpec(
                num_scalar_prefetch=0,
                grid=grid,
                in_specs=in_specs,
                out_specs=out_specs,
                scratch_shapes=scratch,
            ),
            compiler_params=pltpu.CompilerParams(
                dimension_semantics=dims_sem,
                vmem_limit_bytes=vmem_limit,
            ),
        )(xp, w1p, b1p, w2p, b2p)

    try:
        out_p = run(single_buffer_weights=True)
    except Exception:
        # This JAX build rejected pl.Buffered(1); fall back to default buffering.
        out_p = run(single_buffer_weights=False)

    return out_p[:B, :D_out]


# ---------------------------------------------------------------------------
# Self-test
# ---------------------------------------------------------------------------
if __name__ == "__main__":
    key = jax.random.PRNGKey(0)
    kx, kw1, kb1, kw2, kb2, kx2, kw3, kb3 = jax.random.split(key, 8)

    # --- Shapes consistent with the module: batch=8, input=16, hidden=32, output=8. ---
    B, D_in, H, D_out = 8, 16, 32, 8
    x = jax.random.normal(kx, (B, D_in), dtype=jnp.float32)
    bound1 = 1.0 / (D_in ** 0.5)
    w1 = jax.random.uniform(kw1, (D_in, H), jnp.float32, -bound1, bound1)
    b1 = jax.random.uniform(kb1, (H,), jnp.float32, -bound1, bound1)
    bound2 = 1.0 / (H ** 0.5)
    w2 = jax.random.uniform(kw2, (H, D_out), jnp.float32, -bound2, bound2)
    b2 = jax.random.uniform(kb2, (D_out,), jnp.float32, -bound2, bound2)

    ref = jnp.maximum(x @ w1 + b1[None, :], 0.0) @ w2 + b2[None, :]

    # Exact path (f32 on the MXU, weight-resident fast path): tight tolerance.
    params_f32 = prepare_params(w1, b1, w2, b2, mxu_dtype=jnp.float32)
    out_f32 = encoder_layer(x, params_f32)
    jax.block_until_ready(out_f32)
    assert out_f32.shape == (B, D_out)
    assert jnp.allclose(out_f32, ref, atol=1e-4, rtol=1e-4)

    # Production path (bf16 MXU feed, f32 accumulation): relaxed tolerance.
    params_bf16 = prepare_params(w1, b1, w2, b2, mxu_dtype=jnp.bfloat16)
    out_bf16 = encoder_layer(x, params_bf16)
    jax.block_until_ready(out_bf16)
    assert out_bf16.shape == (B, D_out)
    assert jnp.allclose(out_bf16, ref, atol=5e-2, rtol=5e-2)

    # --- Exercise the H-tiled accumulator fallback (forced) on a 2-chunk hidden dim. ---
    B2, H2 = 16, 256
    x2 = jax.random.normal(kx2, (B2, D_in), dtype=jnp.float32)
    w1b = jax.random.uniform(kw3, (D_in, H2), jnp.float32, -bound1, bound1)
    b1b = jax.random.uniform(kb3, (H2,), jnp.float32, -bound1, bound1)
    bound2b = 1.0 / (H2 ** 0.5)
    w2b = jax.random.uniform(kw2, (H2, D_out), jnp.float32, -bound2b, bound2b)
    b2b = jax.random.uniform(kb2, (D_out,), jnp.float32, -bound2b, bound2b)
    ref2 = jnp.maximum(x2 @ w1b + b1b[None, :], 0.0) @ w2b + b2b[None, :]

    params2 = prepare_params(w1b, b1b, w2b, b2b, mxu_dtype=jnp.float32)
    out_ht = encoder_layer(x2, params2, force_h_tiling=True, max_hidden_chunk=128)
    jax.block_until_ready(out_ht)
    assert out_ht.shape == (B2, D_out)
    assert jnp.allclose(out_ht, ref2, atol=1e-3, rtol=1e-3)

    print("KERNEL_OK")
</pallas_src>

<mosaic_0001>
module attributes {stable_mosaic.version = 11 : i64} {
  func.func @_ffn_resident_kernel(%arg0: i32, %arg1: memref<8x128xf32, #tpu.memory_space<vmem>>, %arg2: memref<128x128xf32, #tpu.memory_space<vmem>>, %arg3: memref<1x128xf32, #tpu.memory_space<vmem>>, %arg4: memref<128x128xf32, #tpu.memory_space<vmem>>, %arg5: memref<1x128xf32, #tpu.memory_space<vmem>>, %arg6: memref<8x128xf32, #tpu.memory_space<vmem>>) attributes {dimension_semantics = [#tpu.dimension_semantics<parallel>], iteration_bounds = array<i64: 1>, scalar_prefetch = 0 : i64, scratch_operands = 0 : i64, tpu.core_type = #tpu.core_type<tc>, window_params = [{transform_indices = @transform_0, window_bounds = array<i64: 8, 128>}, {pipeline_mode = #tpu.pipeline_mode<synchronous>, transform_indices = @transform_1, window_bounds = array<i64: 128, 128>}, {pipeline_mode = #tpu.pipeline_mode<synchronous>, transform_indices = @transform_2, window_bounds = array<i64: 1, 128>}, {pipeline_mode = #tpu.pipeline_mode<synchronous>, transform_indices = @transform_3, window_bounds = array<i64: 128, 128>}, {pipeline_mode = #tpu.pipeline_mode<synchronous>, transform_indices = @transform_4, window_bounds = array<i64: 1, 128>}, {transform_indices = @transform_5, window_bounds = array<i64: 8, 128>}]} {
    %c0 = arith.constant 0 : index
    %c0_0 = arith.constant 0 : index
    %0 = vector.load %arg1[%c0, %c0_0] : memref<8x128xf32, #tpu.memory_space<vmem>>, vector<8x128xf32>
    %c0_1 = arith.constant 0 : index
    %c0_2 = arith.constant 0 : index
    %1 = vector.load %arg2[%c0_1, %c0_2] : memref<128x128xf32, #tpu.memory_space<vmem>>, vector<128x128xf32>
    %cst = arith.constant dense<0.000000e+00> : vector<8x128xf32>
    %2 = tpu.matmul %0, %1, %cst {dimension_numbers = #tpu.dot_dimension_numbers<[1], [0], [0], [1], [0, 0, 1, 1], [], []>} : vector<8x128xf32>, vector<128x128xf32>, vector<8x128xf32> -> vector<8x128xf32>
    %c0_3 = arith.constant 0 : index
    %c0_4 = arith.constant 0 : index
    %3 = vector.load %arg3[%c0_3, %c0_4] : memref<1x128xf32, #tpu.memory_space<vmem>>, vector<1x128xf32>
    %4 = vector.broadcast %3 : vector<1x128xf32> to vector<8x128xf32>
    %5 = arith.addf %2, %4 : vector<8x128xf32>
    %cst_5 = arith.constant 0.000000e+00 : f32
    %6 = vector.broadcast %cst_5 : f32 to vector<8x128xf32>
    %7 = arith.maximumf %5, %6 : vector<8x128xf32>
    %c0_6 = arith.constant 0 : index
    %c0_7 = arith.constant 0 : index
    %8 = vector.load %arg4[%c0_6, %c0_7] : memref<128x128xf32, #tpu.memory_space<vmem>>, vector<128x128xf32>
    %cst_8 = arith.constant dense<0.000000e+00> : vector<8x128xf32>
    %9 = tpu.matmul %7, %8, %cst_8 {dimension_numbers = #tpu.dot_dimension_numbers<[1], [0], [0], [1], [0, 0, 1, 1], [], []>} : vector<8x128xf32>, vector<128x128xf32>, vector<8x128xf32> -> vector<8x128xf32>
    %c0_9 = arith.constant 0 : index
    %c0_10 = arith.constant 0 : index
    %10 = vector.load %arg5[%c0_9, %c0_10] : memref<1x128xf32, #tpu.memory_space<vmem>>, vector<1x128xf32>
    %11 = vector.broadcast %10 : vector<1x128xf32> to vector<8x128xf32>
    %12 = arith.addf %9, %11 : vector<8x128xf32>
    %c0_11 = arith.constant 0 : index
    %c0_12 = arith.constant 0 : index
    %13 = vector.load %arg6[%c0_11, %c0_12] : memref<8x128xf32, #tpu.memory_space<vmem>>, vector<8x128xf32>
    tpu.vector_store %arg6[%c0_11, %c0_12], %12 {strides = array<i32>} : memref<8x128xf32, #tpu.memory_space<vmem>>, vector<8x128xf32>,
    return
  }
  func.func @transform_0(%arg0: i32) -> (i32, i32) {
    %c0_i32 = arith.constant 0 : i32
    %c0_i32_0 = arith.constant 0 : i32
    return %arg0, %c0_i32 : i32, i32
  }
  func.func @transform_1(%arg0: i32) -> (i32, i32) {
    %c0_i32 = arith.constant 0 : i32
    %c0_i32_0 = arith.constant 0 : i32
    %c0_i32_1 = arith.constant 0 : i32
    return %c0_i32, %c0_i32_0 : i32, i32
  }
  func.func @transform_2(%arg0: i32) -> (i32, i32) {
    %c0_i32 = arith.constant 0 : i32
    %c0_i32_0 = arith.constant 0 : i32
    %c0_i32_1 = arith.constant 0 : i32
    return %c0_i32, %c0_i32_0 : i32, i32
  }
  func.func @transform_3(%arg0: i32) -> (i32, i32) {
    %c0_i32 = arith.constant 0 : i32
    %c0_i32_0 = arith.constant 0 : i32
    %c0_i32_1 = arith.constant 0 : i32
    return %c0_i32, %c0_i32_0 : i32, i32
  }
  func.func @transform_4(%arg0: i32) -> (i32, i32) {
    %c0_i32 = arith.constant 0 : i32
    %c0_i32_0 = arith.constant 0 : i32
    %c0_i32_1 = arith.constant 0 : i32
    return %c0_i32, %c0_i32_0 : i32, i32
  }
  func.func @transform_5(%arg0: i32) -> (i32, i32) {
    %c0_i32 = arith.constant 0 : i32
    %c0_i32_0 = arith.constant 0 : i32
    return %arg0, %c0_i32 : i32, i32
  }
}

module attributes {stable_mosaic.version = 11 : i64} {
  func.func @_ffn_resident_kernel(%arg0: i32, %arg1: memref<8x128xf32, #tpu.memory_space<vmem>>, %arg2: memref<128x128xf32, #tpu.memory_space<vmem>>, %arg3: memref<1x128xf32, #tpu.memory_space<vmem>>, %arg4: memref<128x128xf32, #tpu.memory_space<vmem>>, %arg5: memref<1x128xf32, #tpu.memory_space<vmem>>, %arg6: memref<8x128xf32, #tpu.memory_space<vmem>>) attributes {dimension_semantics = [#tpu.dimension_semantics<parallel>], iteration_bounds = array<i64: 1>, scalar_prefetch = 0 : i64, scratch_operands = 0 : i64, tpu.core_type = #tpu.core_type<tc>, window_params = [{transform_indices = @transform_0, window_bounds = array<i64: 8, 128>}, {pipeline_mode = #tpu.pipeline_mode<synchronous>, transform_indices = @transform_1, window_bounds = array<i64: 128, 128>}, {pipeline_mode = #tpu.pipeline_mode<synchronous>, transform_indices = @transform_2, window_bounds = array<i64: 1, 128>}, {pipeline_mode = #tpu.pipeline_mode<synchronous>, transform_indices = @transform_3, window_bounds = array<i64: 128, 128>}, {pipeline_mode = #tpu.pipeline_mode<synchronous>, transform_indices = @transform_4, window_bounds = array<i64: 1, 128>}, {transform_indices = @transform_5, window_bounds = array<i64: 8, 128>}]} {
    %c0 = arith.constant 0 : index
    %c0_0 = arith.constant 0 : index
    %0 = vector.load %arg1[%c0, %c0_0] : memref<8x128xf32, #tpu.memory_space<vmem>>, vector<8x128xf32>
    %c0_1 = arith.constant 0 : index
    %c0_2 = arith.constant 0 : index
    %1 = vector.load %arg2[%c0_1, %c0_2] : memref<128x128xf32, #tpu.memory_space<vmem>>, vector<128x128xf32>
    %cst = arith.constant dense<0.000000e+00> : vector<8x128xf32>
    %2 = tpu.matmul %0, %1, %cst {dimension_numbers = #tpu.dot_dimension_numbers<[1], [0], [0], [1], [0, 0, 1, 1], [], []>} : vector<8x128xf32>, vector<128x128xf32>, vector<8x128xf32> -> vector<8x128xf32>
    %c0_3 = arith.constant 0 : index
    %c0_4 = arith.constant 0 : index
    %3 = vector.load %arg3[%c0_3, %c0_4] : memref<1x128xf32, #tpu.memory_space<vmem>>, vector<1x128xf32>
    %4 = vector.broadcast %3 : vector<1x128xf32> to vector<8x128xf32>
    %5 = arith.addf %2, %4 : vector<8x128xf32>
    %cst_5 = arith.constant 0.000000e+00 : f32
    %6 = vector.broadcast %cst_5 : f32 to vector<8x128xf32>
    %7 = arith.maximumf %5, %6 : vector<8x128xf32>
    %c0_6 = arith.constant 0 : index
    %c0_7 = arith.constant 0 : index
    %8 = vector.load %arg4[%c0_6, %c0_7] : memref<128x128xf32, #tpu.memory_space<vmem>>, vector<128x128xf32>
    %cst_8 = arith.constant dense<0.000000e+00> : vector<8x128xf32>
    %9 = tpu.matmul %7, %8, %cst_8 {dimension_numbers = #tpu.dot_dimension_numbers<[1], [0], [0], [1], [0, 0, 1, 1], [], []>} : vector<8x128xf32>, vector<128x128xf32>, vector<8x128xf32> -> vector<8x128xf32>
    %c0_9 = arith.constant 0 : index
    %c0_10 = arith.constant 0 : index
    %10 = vector.load %arg5[%c0_9, %c0_10] : memref<1x128xf32, #tpu.memory_space<vmem>>, vector<1x128xf32>
    %11 = vector.broadcast %10 : vector<1x128xf32> to vector<8x128xf32>
    %12 = arith.addf %9, %11 : vector<8x128xf32>
    %c0_11 = arith.constant 0 : index
    %c0_12 = arith.constant 0 : index
    %13 = vector.load %arg6[%c0_11, %c0_12] : memref<8x128xf32, #tpu.memory_space<vmem>>, vector<8x128xf32>
    tpu.vector_store %arg6[%c0_11, %c0_12], %12 {strides = array<i32>} : memref<8x128xf32, #tpu.memory_space<vmem>>, vector<8x128xf32>,
    return
  }
  func.func @transform_0(%arg0: i32) -> (i32, i32) {
    %c0_i32 = arith.constant 0 : i32
    %c0_i32_0 = arith.constant 0 : i32
    return %arg0, %c0_i32 : i32, i32
  }
  func.func @transform_1(%arg0: i32) -> (i32, i32) {
    %c0_i32 = arith.constant 0 : i32
    %c0_i32_0 = arith.constant 0 : i32
    %c0_i32_1 = arith.constant 0 : i32
    return %c0_i32, %c0_i32_0 : i32, i32
  }
  func.func @transform_2(%arg0: i32) -> (i32, i32) {
    %c0_i32 = arith.constant 0 : i32
    %c0_i32_0 = arith.constant 0 : i32
    %c0_i32_1 = arith.constant 0 : i32
    return %c0_i32, %c0_i32_0 : i32, i32
  }
  func.func @transform_3(%arg0: i32) -> (i32, i32) {
    %c0_i32 = arith.constant 0 : i32
    %c0_i32_0 = arith.constant 0 : i32
    %c0_i32_1 = arith.constant 0 : i32
    return %c0_i32, %c0_i32_0 : i32, i32
  }
  func.func @transform_4(%arg0: i32) -> (i32, i32) {
    %c0_i32 = arith.constant 0 : i32
    %c0_i32_0 = arith.constant 0 : i32
    %c0_i32_1 = arith.constant 0 : i32
    return %c0_i32, %c0_i32_0 : i32, i32
  }
  func.func @transform_5(%arg0: i32) -> (i32, i32) {
    %c0_i32 = arith.constant 0 : i32
    %c0_i32_0 = arith.constant 0 : i32
    return %arg0, %c0_i32 : i32, i32
  }
}

</mosaic_0001>

<bundles_post_ra>
// kernel: tpu_custom_call.1
= control target key start
LH: loop header
LB: loop body
LE: loop exit
PB: predicated region body
PF: predicated region fallthrough
CT: control target
= control target key end

     0   :  { %10 = vsyncpa [#allocation3], 0  ;;  %s555_s0 = inlined_call_operand.hbm [shape: f32[8,128], index: 0, kind: input, shape index: {}]   ;;  %s556_s1 = inlined_call_operand.hbm [shape: f32[128,128], index: 1, kind: input, shape index: {}]   ;;  %s557_s2 = inlined_call_operand.vmem [shape: f32[1,128], index: 2, kind: input, shape index: {}]   ;;  %s558_s3 = inlined_call_operand.hbm [shape: f32[128,128], index: 3, kind: input, shape index: {}]   ;;  %s559_s4 = inlined_call_operand.vmem [shape: f32[1,128], index: 4, kind: input, shape index: {}]   ;;  %s560_s5 = inlined_call_operand.hbm [shape: f32[8,128], index: 5, kind: output, shape index: {}]  }
   0x1   :  { %11 = vsyncpa [#allocation6], 0 }
   0x2   :  { %12 = vsyncpa [#allocation4], 0  ;;  %s465_s18 = smov [#allocation5]  }
   0x3   :  { %s28_s19 = sshll.u32 %s465_s18, 4  ;;  %s29_s19 = int_to_ptr.vmem [resolvable:$true] %s28_s19 }
   0x4   :  { %s387_s20 = scalar_lea.vmem %s29_s19, 2048  ;;  %p392_p1 = scmp.lt.s32.totalorder %s29_s19, %s29_s19 }
   0x5   :  { %p388_p0 = scmp.ne.s32.totalorder %s29_s19, %s387_s20  ;;  %p393_p2 = scmp.lt.s32.totalorder %s387_s20, %s387_s20 }
   0x7   :  { %p394_p3 = por %p393_p2, %p392_p1 }
   0x9   :  { %p395_p4 = pnand %p394_p3, %p388_p0 }
   0xb   :  { %398 = shalt.err (!%p395_p4)
}
   0xc   :  { %s466_s21 = smov 128   ;;  %s467_s22 = smov 8  }
   0xd   :  { %34 = dma.hbm_to_vmem [thread:$0]  %s556_s1, 2048, %s29_s19, [#allocation6], %s466_s21, %s466_s21, %s467_s22  }
   0xe   :  { %s468_s25 = smov [#allocation2]   ;;  %s469_s27 = smov [#allocation7]  }
   0xf   :  { %s19_s26 = sshll.u32 %s468_s25, 4  ;;  %s42_s28 = sshll.u32 %s469_s27, 4  ;;  %s20_s26 = int_to_ptr.vmem [resolvable:$true] %s19_s26  ;;  %s43_s28 = int_to_ptr.vmem [resolvable:$true] %s42_s28 }
  0x10   :  { %s407_s29 = scalar_lea.vmem %s20_s26, 128  ;;  %p412_p6 = scmp.lt.s32.totalorder %s20_s26, %s20_s26 }
  0x11   :  { %p408_p5 = scmp.ne.s32.totalorder %s20_s26, %s407_s29  ;;  %p413_p7 = scmp.lt.s32.totalorder %s407_s29, %s407_s29 }
  0x13   :  { %p414_p8 = por %p413_p7, %p412_p6 }
  0x15   :  { %p415_p9 = pnand %p414_p8, %p408_p5 }
  0x17   :  { %418 = shalt.err (!%p415_p9)
}
  0x18   :  { %22 = dma.hbm_to_vmem [thread:$0]  %s555_s0, 128, %s20_s26, [#allocation3]  }
  0x19   :  { %s427_s7 = scalar_lea.vmem %s43_s28, 2048  ;;  %p432_p11 = scmp.lt.s32.totalorder %s43_s28, %s43_s28 }
  0x1a   :  { %p428_p10 = scmp.ne.s32.totalorder %s43_s28, %s427_s7  ;;  %p433_p12 = scmp.lt.s32.totalorder %s427_s7, %s427_s7 }
  0x1c   :  { %p434_p13 = por %p433_p12, %p432_p11 }
  0x1e   :  { %p435_p0 = pnand %p434_p13, %p428_p10 }
  0x20   :  { %438 = shalt.err (!%p435_p0)
}
  0x21   :  { %48 = dma.hbm_to_vmem [thread:$0]  %s558_s3, 2048, %s43_s28, [#allocation6], %s466_s21, %s466_s21, %s467_s22  }
  0x22   :  { %459 = dma.done.wait [#allocation3], 128  }
  0x23   :  { %460 = vsyncadd [#allocation3], 4294967168 }
  0x24   :  { %461 = dma.done.wait [#allocation6], 4096  }
  0x25   :  { %462 = vsyncadd [#allocation6], 4294963200  ;;  %v470_v0 = vmov 0.0   ;;  %vm471_vm0 = vmmov 0   ;;  %v76_v1 = vld [vmem:[#allocation5 + $0x78] sm:$0xff]  ;;  %v75_v2 = vld [vmem:[#allocation5 + $0x70] sm:$0xff] }
  0x26   :  { %301 = vmatprep.subr.mxu0 %v470_v0  ;;  %333 = vmatprep.mubr.msk.f32.mxu0 %vm471_vm0, %v470_v0  ;;  %v74_v3 = vld [vmem:[#allocation5 + $0x68] sm:$0xff]  ;;  %v73_v4 = vld [vmem:[#allocation5 + $0x60] sm:$0xff]  ;;  %v170_v5 = vld [vmem:[#allocation7 + $0x78] sm:$0xff]  ;;  %s472_s11 = smov [#allocation8]  }
  0x27   :  { %336 = vmatprep.subr.mxu1 %v470_v0  ;;  %368 = vmatprep.mubr.msk.f32.mxu1 %vm471_vm0, %v470_v0  ;;  %v72_v6 = vld [vmem:[#allocation5 + $0x58] sm:$0xff]  ;;  %v169_v7 = vld [vmem:[#allocation7 + $0x70] sm:$0xff]  ;;  %v168_v8 = vld [vmem:[#allocation7 + $0x68] sm:$0xff]  ;;  %s255_s12 = sshll.u32 %s472_s11, 4  ;;  %s256_s12 = int_to_ptr.vmem [resolvable:$true] %s255_s12 }
  0x28   :  { %302 = vmatpush3.msra.mxu0 %v76_v1  ;;  %337 = vmatpush3.msra.mxu1 %v170_v5  ;;  %v71_v9 = vld [vmem:[#allocation5 + $0x50] sm:$0xff]  ;;  %v167_v10 = vld [vmem:[#allocation7 + $0x60] sm:$0xff]  ;;  %v70_v11 = vld [vmem:[#allocation5 + $0x48] sm:$0xff]  ;;  %s439_s13 = scalar_lea.vmem %s256_s12, 128  ;;  %p444_p2 = scmp.lt.s32.totalorder %s256_s12, %s256_s12 }
  0x29   :  { %303 = vmatprep.subr.mxu0 %v470_v0  ;;  %338 = vmatprep.subr.mxu1 %v470_v0  ;;  %v166_v12 = vld [vmem:[#allocation7 + $0x58] sm:$0xff]  ;;  %v69_v13 = vld [vmem:[#allocation5 + $0x40] sm:$0xff]  ;;  %v165_v14 = vld [vmem:[#allocation7 + $0x50] sm:$0xff]  ;;  %p440_p1 = scmp.ne.s32.totalorder %s256_s12, %s439_s13  ;;  %p445_p3 = scmp.lt.s32.totalorder %s439_s13, %s439_s13 }
  0x2a   :  { %304 = vmatpush3.msra.mxu0 %v75_v2  ;;  %339 = vmatpush3.msra.mxu1 %v169_v7  ;;  %v68_v15 = vld [vmem:[#allocation5 + $0x38] sm:$0xff]  ;;  %v164_v16 = vld [vmem:[#allocation7 + $0x48] sm:$0xff]  ;;  %v67_v17 = vld [vmem:[#allocation5 + $0x30] sm:$0xff] }
  0x2b   :  { %305 = vmatprep.subr.mxu0 %v470_v0  ;;  %340 = vmatprep.subr.mxu1 %v470_v0  ;;  %v163_v18 = vld [vmem:[#allocation7 + $0x40] sm:$0xff]  ;;  %v66_v19 = vld [vmem:[#allocation5 + $0x28] sm:$0xff]  ;;  %v162_v20 = vld [vmem:[#allocation7 + $0x38] sm:$0xff]  ;;  %p446_p4 = por %p445_p3, %p444_p2 }
  0x2c   :  { %306 = vmatpush3.msra.mxu0 %v74_v3  ;;  %341 = vmatpush3.msra.mxu1 %v168_v8  ;;  %v65_v21 = vld [vmem:[#allocation5 + $0x20] sm:$0xff]  ;;  %v161_v22 = vld [vmem:[#allocation7 + $0x30] sm:$0xff]  ;;  %v64_v23 = vld [vmem:[#allocation5 + $0x18] sm:$0xff] }
  0x2d   :  { %307 = vmatprep.subr.mxu0 %v470_v0  ;;  %342 = vmatprep.subr.mxu1 %v470_v0  ;;  %v160_v24 = vld [vmem:[#allocation7 + $0x28] sm:$0xff]  ;;  %v63_v25 = vld [vmem:[#allocation5 + $0x10] sm:$0xff]  ;;  %v159_v26 = vld [vmem:[#allocation7 + $0x20] sm:$0xff]  ;;  %p447_p5 = pnand %p446_p4, %p440_p1 }
  0x2e   :  { %308 = vmatpush3.msra.mxu0 %v73_v4  ;;  %343 = vmatpush3.msra.mxu1 %v167_v10  ;;  %v62_v27 = vld [vmem:[#allocation5 + $0x8] sm:$0xff]  ;;  %v158_v28 = vld [vmem:[#allocation7 + $0x18] sm:$0xff]  ;;  %v61_v29 = vld [vmem:[#allocation5] sm:$0xff] }
  0x2f   :  { %309 = vmatprep.subr.mxu0 %v470_v0  ;;  %344 = vmatprep.subr.mxu1 %v470_v0  ;;  %v60_v30 = vld [vmem:[#allocation2] sm:$0xff]  ;;  %v157_v31 = vld [vmem:[#allocation7 + $0x10] sm:$0xff]  ;;  %v156_v32 = vld [vmem:[#allocation7 + $0x8] sm:$0xff] }
  0x30   :  { %310 = vmatpush3.msra.mxu0 %v72_v6  ;;  %345 = vmatpush3.msra.mxu1 %v166_v12  ;;  %v155_v33 = vld [vmem:[#allocation7] sm:$0xff]  ;;  %v265_v34 = vld [vmem:[%s557_s2] ss:$0 sm:$0xff] }
  0x31   :  { %311 = vmatprep.subr.mxu0 %v470_v0  ;;  %346 = vmatprep.subr.mxu1 %v470_v0  ;;  %v266_v39 = vld [vmem:[%s559_s4] ss:$0 sm:$0xff] }
  0x32   :  { %312 = vmatpush3.msra.mxu0 %v71_v9  ;;  %347 = vmatpush3.msra.mxu1 %v165_v14 }
  0x33   :  { %313 = vmatprep.subr.mxu0 %v470_v0  ;;  %348 = vmatprep.subr.mxu1 %v470_v0 }
  0x34   :  { %314 = vmatpush3.msra.mxu0 %v70_v11  ;;  %349 = vmatpush3.msra.mxu1 %v164_v16 }
  0x35   :  { %315 = vmatprep.subr.mxu0 %v470_v0  ;;  %350 = vmatprep.subr.mxu1 %v470_v0 }
  0x36   :  { %316 = vmatpush3.msra.mxu0 %v69_v13  ;;  %351 = vmatpush3.msra.mxu1 %v163_v18 }
  0x37   :  { %317 = vmatprep.subr.mxu0 %v470_v0  ;;  %352 = vmatprep.subr.mxu1 %v470_v0 }
  0x38   :  { %318 = vmatpush3.msra.mxu0 %v68_v15  ;;  %353 = vmatpush3.msra.mxu1 %v162_v20 }
  0x39   :  { %319 = vmatprep.subr.mxu0 %v470_v0  ;;  %354 = vmatprep.subr.mxu1 %v470_v0 }
  0x3a   :  { %320 = vmatpush3.msra.mxu0 %v67_v17  ;;  %355 = vmatpush3.msra.mxu1 %v161_v22 }
  0x3b   :  { %321 = vmatprep.subr.mxu0 %v470_v0  ;;  %356 = vmatprep.subr.mxu1 %v470_v0 }
  0x3c   :  { %322 = vmatpush3.msra.mxu0 %v66_v19  ;;  %357 = vmatpush3.msra.mxu1 %v160_v24 }
  0x3d   :  { %323 = vmatprep.subr.mxu0 %v470_v0  ;;  %358 = vmatprep.subr.mxu1 %v470_v0 }
  0x3e   :  { %324 = vmatpush3.msra.mxu0 %v65_v21  ;;  %359 = vmatpush3.msra.mxu1 %v159_v26 }
  0x3f   :  { %325 = vmatprep.subr.mxu0 %v470_v0  ;;  %360 = vmatprep.subr.mxu1 %v470_v0 }
  0x40   :  { %326 = vmatpush3.msra.mxu0 %v64_v23  ;;  %361 = vmatpush3.msra.mxu1 %v158_v28 }
  0x41   :  { %327 = vmatprep.subr.mxu0 %v470_v0  ;;  %362 = vmatprep.subr.mxu1 %v470_v0 }
  0x42   :  { %328 = vmatpush3.msra.mxu0 %v63_v25  ;;  %363 = vmatpush3.msra.mxu1 %v157_v31 }
  0x43   :  { %329 = vmatprep.subr.mxu0 %v470_v0  ;;  %364 = vmatprep.subr.mxu1 %v470_v0 }
  0x44   :  { %330 = vmatpush3.msra.mxu0 %v62_v27  ;;  %365 = vmatpush3.msra.mxu1 %v156_v32 }
  0x45   :  { %331 = vmatprep.subr.mxu0 %v470_v0  ;;  %366 = vmatprep.subr.mxu1 %v470_v0 }
  0x46   :  { %332 = vmatpush3.msra.mxu0 %v61_v29  ;;  %367 = vmatpush3.msra.mxu1 %v155_v33 }
  0x47   :  { %334 = vmatmul.mubr.f32.vlgmr.msra.gmra.mxu0 %v60_v30 }
 0x107   :  { %v150_v35 = vpop.f32.mrf.mxu0 }
 0x108   :  { %v151_v36 = vadd.f32 %v265_v34, %v150_v35 }
 0x109   :  { %v335_v37 = vpop.f32.mrf.mxu0 }
 0x10a   :  { %v154_v38 = vmax.f32 %v151_v36, 0.0 }
 0x10c   :  { %369 = vmatmul.mubr.f32.vlgmr.msra.gmra.mxu1 %v154_v38 }
 0x1cc   :  { %v244_v40 = vpop.f32.mrf.mxu1 }
 0x1cd   :  { %v245_v41 = vadd.f32 %v266_v39, %v244_v40 }
 0x1ce   :  { %v370_v42 = vpop.f32.mrf.mxu1 }
 0x1cf   :  { %248 = vst [vmem:[#allocation8] sm:$0xff] %v245_v41 }
 0x1d0   :  { %450 = shalt.err (!%p447_p5)
}
 0x1d1   :  { %258 = dma.vmem_to_hbm [thread:$0]  %s256_s12, 128, %s560_s5, [#allocation4]  }
 0x1d2   :  { %463 = dma.done.wait [#allocation4], 128  }
 0x1d3   :  { %464 = vsyncadd [#allocation4], 4294967168 }
 0x1d4   :  { %262 = vsyncpa [#allocation3], 1 }
 0x1d5   :  { %263 = vsyncpa [#allocation6], 1 }
 0x1d6   :  { %264 = vsyncpa [#allocation4], 1 }

// kernel: tpu_custom_call.1
= control target key start
LH: loop header
LB: loop body
LE: loop exit
PB: predicated region body
PF: predicated region fallthrough
CT: control target
= control target key end

     0   :  { %10 = vsyncpa [#allocation3], 0  ;;  %s555_s0 = inlined_call_operand.hbm [shape: f32[8,128], index: 0, kind: input, shape index: {}]   ;;  %s556_s1 = inlined_call_operand.hbm [shape: f32[128,128], index: 1, kind: input, shape index: {}]   ;;  %s557_s2 = inlined_call_operand.vmem [shape: f32[1,128], index: 2, kind: input, shape index: {}]   ;;  %s558_s3 = inlined_call_operand.hbm [shape: f32[128,128], index: 3, kind: input, shape index: {}]   ;;  %s559_s4 = inlined_call_operand.vmem [shape: f32[1,128], index: 4, kind: input, shape index: {}]   ;;  %s560_s5 = inlined_call_operand.hbm [shape: f32[8,128], index: 5, kind: output, shape index: {}]  }
   0x1   :  { %11 = vsyncpa [#allocation6], 0 }
   0x2   :  { %12 = vsyncpa [#allocation4], 0  ;;  %s465_s18 = smov [#allocation5]  }
   0x3   :  { %s28_s19 = sshll.u32 %s465_s18, 4  ;;  %s29_s19 = int_to_ptr.vmem [resolvable:$true] %s28_s19 }
   0x4   :  { %s387_s20 = scalar_lea.vmem %s29_s19, 2048  ;;  %p392_p1 = scmp.lt.s32.totalorder %s29_s19, %s29_s19 }
   0x5   :  { %p388_p0 = scmp.ne.s32.totalorder %s29_s19, %s387_s20  ;;  %p393_p2 = scmp.lt.s32.totalorder %s387_s20, %s387_s20 }
   0x7   :  { %p394_p3 = por %p393_p2, %p392_p1 }
   0x9   :  { %p395_p4 = pnand %p394_p3, %p388_p0 }
   0xb   :  { %398 = shalt.err (!%p395_p4)
}
   0xc   :  { %s466_s21 = smov 128   ;;  %s467_s22 = smov 8  }
   0xd   :  { %34 = dma.hbm_to_vmem [thread:$0]  %s556_s1, 2048, %s29_s19, [#allocation6], %s466_s21, %s466_s21, %s467_s22  }
   0xe   :  { %s468_s25 = smov [#allocation2]   ;;  %s469_s27 = smov [#allocation7]  }
   0xf   :  { %s19_s26 = sshll.u32 %s468_s25, 4  ;;  %s42_s28 = sshll.u32 %s469_s27, 4  ;;  %s20_s26 = int_to_ptr.vmem [resolvable:$true] %s19_s26  ;;  %s43_s28 = int_to_ptr.vmem [resolvable:$true] %s42_s28 }
  0x10   :  { %s407_s29 = scalar_lea.vmem %s20_s26, 128  ;;  %p412_p6 = scmp.lt.s32.totalorder %s20_s26, %s20_s26 }
  0x11   :  { %p408_p5 = scmp.ne.s32.totalorder %s20_s26, %s407_s29  ;;  %p413_p7 = scmp.lt.s32.totalorder %s407_s29, %s407_s29 }
  0x13   :  { %p414_p8 = por %p413_p7, %p412_p6 }
  0x15   :  { %p415_p9 = pnand %p414_p8, %p408_p5 }
  0x17   :  { %418 = shalt.err (!%p415_p9)
}
  0x18   :  { %22 = dma.hbm_to_vmem [thread:$0]  %s555_s0, 128, %s20_s26, [#allocation3]  }
  0x19   :  { %s427_s7 = scalar_lea.vmem %s43_s28, 2048  ;;  %p432_p11 = scmp.lt.s32.totalorder %s43_s28, %s43_s28 }
  0x1a   :  { %p428_p10 = scmp.ne.s32.totalorder %s43_s28, %s427_s7  ;;  %p433_p12 = scmp.lt.s32.totalorder %s427_s7, %s427_s7 }
  0x1c   :  { %p434_p13 = por %p433_p12, %p432_p11 }
  0x1e   :  { %p435_p0 = pnand %p434_p13, %p428_p10 }
  0x20   :  { %438 = shalt.err (!%p435_p0)
}
  0x21   :  { %48 = dma.hbm_to_vmem [thread:$0]  %s558_s3, 2048, %s43_s28, [#allocation6], %s466_s21, %s466_s21, %s467_s22  }
  0x22   :  { %459 = dma.done.wait [#allocation3], 128  }
  0x23   :  { %460 = vsyncadd [#allocation3], 4294967168 }
  0x24   :  { %461 = dma.done.wait [#allocation6], 4096  }
  0x25   :  { %462 = vsyncadd [#allocation6], 4294963200  ;;  %v470_v0 = vmov 0.0   ;;  %vm471_vm0 = vmmov 0   ;;  %v76_v1 = vld [vmem:[#allocation5 + $0x78] sm:$0xff]  ;;  %v75_v2 = vld [vmem:[#allocation5 + $0x70] sm:$0xff] }
  0x26   :  { %301 = vmatprep.subr.mxu0 %v470_v0  ;;  %333 = vmatprep.mubr.msk.f32.mxu0 %vm471_vm0, %v470_v0  ;;  %v74_v3 = vld [vmem:[#allocation5 + $0x68] sm:$0xff]  ;;  %v73_v4 = vld [vmem:[#allocation5 + $0x60] sm:$0xff]  ;;  %v170_v5 = vld [vmem:[#allocation7 + $0x78] sm:$0xff]  ;;  %s472_s11 = smov [#allocation8]  }
  0x27   :  { %336 = vmatprep.subr.mxu1 %v470_v0  ;;  %368 = vmatprep.mubr.msk.f32.mxu1 %vm471_vm0, %v470_v0  ;;  %v72_v6 = vld [vmem:[#allocation5 + $0x58] sm:$0xff]  ;;  %v169_v7 = vld [vmem:[#allocation7 + $0x70] sm:$0xff]  ;;  %v168_v8 = vld [vmem:[#allocation7 + $0x68] sm:$0xff]  ;;  %s255_s12 = sshll.u32 %s472_s11, 4  ;;  %s256_s12 = int_to_ptr.vmem [resolvable:$true] %s255_s12 }
  0x28   :  { %302 = vmatpush3.msra.mxu0 %v76_v1  ;;  %337 = vmatpush3.msra.mxu1 %v170_v5  ;;  %v71_v9 = vld [vmem:[#allocation5 + $0x50] sm:$0xff]  ;;  %v167_v10 = vld [vmem:[#allocation7 + $0x60] sm:$0xff]  ;;  %v70_v11 = vld [vmem:[#allocation5 + $0x48] sm:$0xff]  ;;  %s439_s13 = scalar_lea.vmem %s256_s12, 128  ;;  %p444_p2 = scmp.lt.s32.totalorder %s256_s12, %s256_s12 }
  0x29   :  { %303 = vmatprep.subr.mxu0 %v470_v0  ;;  %338 = vmatprep.subr.mxu1 %v470_v0  ;;  %v166_v12 = vld [vmem:[#allocation7 + $0x58] sm:$0xff]  ;;  %v69_v13 = vld [vmem:[#allocation5 + $0x40] sm:$0xff]  ;;  %v165_v14 = vld [vmem:[#allocation7 + $0x50] sm:$0xff]  ;;  %p440_p1 = scmp.ne.s32.totalorder %s256_s12, %s439_s13  ;;  %p445_p3 = scmp.lt.s32.totalorder %s439_s13, %s439_s13 }
  0x2a   :  { %304 = vmatpush3.msra.mxu0 %v75_v2  ;;  %339 = vmatpush3.msra.mxu1 %v169_v7  ;;  %v68_v15 = vld [vmem:[#allocation5 + $0x38] sm:$0xff]  ;;  %v164_v16 = vld [vmem:[#allocation7 + $0x48] sm:$0xff]  ;;  %v67_v17 = vld [vmem:[#allocation5 + $0x30] sm:$0xff] }
  0x2b   :  { %305 = vmatprep.subr.mxu0 %v470_v0  ;;  %340 = vmatprep.subr.mxu1 %v470_v0  ;;  %v163_v18 = vld [vmem:[#allocation7 + $0x40] sm:$0xff]  ;;  %v66_v19 = vld [vmem:[#allocation5 + $0x28] sm:$0xff]  ;;  %v162_v20 = vld [vmem:[#allocation7 + $0x38] sm:$0xff]  ;;  %p446_p4 = por %p445_p3, %p444_p2 }
  0x2c   :  { %306 = vmatpush3.msra.mxu0 %v74_v3  ;;  %341 = vmatpush3.msra.mxu1 %v168_v8  ;;  %v65_v21 = vld [vmem:[#allocation5 + $0x20] sm:$0xff]  ;;  %v161_v22 = vld [vmem:[#allocation7 + $0x30] sm:$0xff]  ;;  %v64_v23 = vld [vmem:[#allocation5 + $0x18] sm:$0xff] }
  0x2d   :  { %307 = vmatprep.subr.mxu0 %v470_v0  ;;  %342 = vmatprep.subr.mxu1 %v470_v0  ;;  %v160_v24 = vld [vmem:[#allocation7 + $0x28] sm:$0xff]  ;;  %v63_v25 = vld [vmem:[#allocation5 + $0x10] sm:$0xff]  ;;  %v159_v26 = vld [vmem:[#allocation7 + $0x20] sm:$0xff]  ;;  %p447_p5 = pnand %p446_p4, %p440_p1 }
  0x2e   :  { %308 = vmatpush3.msra.mxu0 %v73_v4  ;;  %343 = vmatpush3.msra.mxu1 %v167_v10  ;;  %v62_v27 = vld [vmem:[#allocation5 + $0x8] sm:$0xff]  ;;  %v158_v28 = vld [vmem:[#allocation7 + $0x18] sm:$0xff]  ;;  %v61_v29 = vld [vmem:[#allocation5] sm:$0xff] }
  0x2f   :  { %309 = vmatprep.subr.mxu0 %v470_v0  ;;  %344 = vmatprep.subr.mxu1 %v470_v0  ;;  %v60_v30 = vld [vmem:[#allocation2] sm:$0xff]  ;;  %v157_v31 = vld [vmem:[#allocation7 + $0x10] sm:$0xff]  ;;  %v156_v32 = vld [vmem:[#allocation7 + $0x8] sm:$0xff] }
  0x30   :  { %310 = vmatpush3.msra.mxu0 %v72_v6  ;;  %345 = vmatpush3.msra.mxu1 %v166_v12  ;;  %v155_v33 = vld [vmem:[#allocation7] sm:$0xff]  ;;  %v265_v34 = vld [vmem:[%s557_s2] ss:$0 sm:$0xff] }
  0x31   :  { %311 = vmatprep.subr.mxu0 %v470_v0  ;;  %346 = vmatprep.subr.mxu1 %v470_v0  ;;  %v266_v39 = vld [vmem:[%s559_s4] ss:$0 sm:$0xff] }
  0x32   :  { %312 = vmatpush3.msra.mxu0 %v71_v9  ;;  %347 = vmatpush3.msra.mxu1 %v165_v14 }
  0x33   :  { %313 = vmatprep.subr.mxu0 %v470_v0  ;;  %348 = vmatprep.subr.mxu1 %v470_v0 }
  0x34   :  { %314 = vmatpush3.msra.mxu0 %v70_v11  ;;  %349 = vmatpush3.msra.mxu1 %v164_v16 }
  0x35   :  { %315 = vmatprep.subr.mxu0 %v470_v0  ;;  %350 = vmatprep.subr.mxu1 %v470_v0 }
  0x36   :  { %316 = vmatpush3.msra.mxu0 %v69_v13  ;;  %351 = vmatpush3.msra.mxu1 %v163_v18 }
  0x37   :  { %317 = vmatprep.subr.mxu0 %v470_v0  ;;  %352 = vmatprep.subr.mxu1 %v470_v0 }
  0x38   :  { %318 = vmatpush3.msra.mxu0 %v68_v15  ;;  %353 = vmatpush3.msra.mxu1 %v162_v20 }
  0x39   :  { %319 = vmatprep.subr.mxu0 %v470_v0  ;;  %354 = vmatprep.subr.mxu1 %v470_v0 }
  0x3a   :  { %320 = vmatpush3.msra.mxu0 %v67_v17  ;;  %355 = vmatpush3.msra.mxu1 %v161_v22 }
  0x3b   :  { %321 = vmatprep.subr.mxu0 %v470_v0  ;;  %356 = vmatprep.subr.mxu1 %v470_v0 }
  0x3c   :  { %322 = vmatpush3.msra.mxu0 %v66_v19  ;;  %357 = vmatpush3.msra.mxu1 %v160_v24 }
  0x3d   :  { %323 = vmatprep.subr.mxu0 %v470_v0  ;;  %358 = vmatprep.subr.mxu1 %v470_v0 }
  0x3e   :  { %324 = vmatpush3.msra.mxu0 %v65_v21  ;;  %359 = vmatpush3.msra.mxu1 %v159_v26 }
  0x3f   :  { %325 = vmatprep.subr.mxu0 %v470_v0  ;;  %360 = vmatprep.subr.mxu1 %v470_v0 }
  0x40   :  { %326 = vmatpush3.msra.mxu0 %v64_v23  ;;  %361 = vmatpush3.msra.mxu1 %v158_v28 }
  0x41   :  { %327 = vmatprep.subr.mxu0 %v470_v0  ;;  %362 = vmatprep.subr.mxu1 %v470_v0 }
  0x42   :  { %328 = vmatpush3.msra.mxu0 %v63_v25  ;;  %363 = vmatpush3.msra.mxu1 %v157_v31 }
  0x43   :  { %329 = vmatprep.subr.mxu0 %v470_v0  ;;  %364 = vmatprep.subr.mxu1 %v470_v0 }
  0x44   :  { %330 = vmatpush3.msra.mxu0 %v62_v27  ;;  %365 = vmatpush3.msra.mxu1 %v156_v32 }
  0x45   :  { %331 = vmatprep.subr.mxu0 %v470_v0  ;;  %366 = vmatprep.subr.mxu1 %v470_v0 }
  0x46   :  { %332 = vmatpush3.msra.mxu0 %v61_v29  ;;  %367 = vmatpush3.msra.mxu1 %v155_v33 }
  0x47   :  { %334 = vmatmul.mubr.f32.vlgmr.msra.gmra.mxu0 %v60_v30 }
 0x107   :  { %v150_v35 = vpop.f32.mrf.mxu0 }
 0x108   :  { %v151_v36 = vadd.f32 %v265_v34, %v150_v35 }
 0x109   :  { %v335_v37 = vpop.f32.mrf.mxu0 }
 0x10a   :  { %v154_v38 = vmax.f32 %v151_v36, 0.0 }
 0x10c   :  { %369 = vmatmul.mubr.f32.vlgmr.msra.gmra.mxu1 %v154_v38 }
 0x1cc   :  { %v244_v40 = vpop.f32.mrf.mxu1 }
 0x1cd   :  { %v245_v41 = vadd.f32 %v266_v39, %v244_v40 }
 0x1ce   :  { %v370_v42 = vpop.f32.mrf.mxu1 }
 0x1cf   :  { %248 = vst [vmem:[#allocation8] sm:$0xff] %v245_v41 }
 0x1d0   :  { %450 = shalt.err (!%p447_p5)
}
 0x1d1   :  { %258 = dma.vmem_to_hbm [thread:$0]  %s256_s12, 128, %s560_s5, [#allocation4]  }
 0x1d2   :  { %463 = dma.done.wait [#allocation4], 128  }
 0x1d3   :  { %464 = vsyncadd [#allocation4], 4294967168 }
 0x1d4   :  { %262 = vsyncpa [#allocation3], 1 }
 0x1d5   :  { %263 = vsyncpa [#allocation6], 1 }
 0x1d6   :  { %264 = vsyncpa [#allocation4], 1 }

</bundles_post_ra>
